<compile_context>
chip_gen: v6e
topology: v6e:2x2x1
jax: 0.10.0
libtpu: 0.0.40
codegen_flags: <defaults>
</compile_context>

<pallas_src>
import functools
import math

import jax
import jax.numpy as jnp
from jax import lax
from jax.experimental import pallas as pl
from jax.experimental.pallas import tpu as pltpu

_LANE = 128
_SUBLANE = 8


def _round_up(x, m):
    return ((x + m - 1) // m) * m


def _pad_axis(a, axis, target):
    pad = target - a.shape[axis]
    if pad <= 0:
        return a
    widths = [(0, 0)] * a.ndim
    widths[axis] = (0, pad)
    return jnp.pad(a, widths)


def _phys_vmem_bytes(shape, dtype):
    """Physical VMEM footprint of ONE buffer of `shape`/`dtype`:
    last dim lane-padded to 128, second-last sublane-padded (8 f32 / 16 bf16)."""
    itemsize = jnp.dtype(dtype).itemsize
    if len(shape) == 0:
        return 4 * _LANE
    if len(shape) == 1:
        return _round_up(int(shape[0]), _LANE) * itemsize
    sublane = 8 * (4 // itemsize)
    lead = 1
    for d in shape[:-2]:
        lead *= int(d)
    return (lead * _round_up(int(shape[-2]), sublane)
            * _round_up(int(shape[-1]), _LANE) * itemsize)


def _ffn_kernel(x_ref, w0_ref, b0_ref, wh_ref, bh_ref, wl_ref, bl_ref, o_ref,
                *, n_hidden):
    compute_dtype = w0_ref.dtype           # bf16 (or f32 if disabled)

    # First layer: (tm, in_f) @ (in_f, H_pad) on the MXU, f32 accumulate,
    # f32 bias add + tanh (EUP).
    h = jnp.tanh(
        jnp.dot(x_ref[...].astype(compute_dtype), w0_ref[...],
                preferred_element_type=jnp.float32) + b0_ref[...])

    def layer(l, h):
        return jnp.tanh(
            jnp.dot(h.astype(compute_dtype), wh_ref[l],
                    preferred_element_type=jnp.float32) + bh_ref[l])

    if n_hidden > 0:
        if n_hidden <= 4:
            for l in range(n_hidden):           # shallow: static unroll
                h = layer(l, h)
        else:                                   # deep: visible loop, bounded live ranges
            h = lax.fori_loop(0, n_hidden, layer, h, unroll=True)

    # Final linear layer (no activation). Compute at the 128-lane-padded width
    # in VMEM, then store only the real columns (no padded HBM writeback).
    out_full = (jnp.dot(h.astype(compute_dtype), wl_ref[...],
                        preferred_element_type=jnp.float32) + bl_ref[...])
    o_ref[...] = out_full[:, :o_ref.shape[1]].astype(o_ref.dtype)


def feedforward_forward(x, params, *, row_tile=2048, use_bf16_weights=True):
    """Fused Pallas forward for the FeedForward MLP.

    Args:
      x: (n_samples, input_size) float32 coordinates.
      params: dict with pre-transposed weights:
        'w0t': (input_size, nr_neurons), 'b0': (nr_neurons,)
        'wht': (hidden_size, nr_neurons, nr_neurons), 'bh': (hidden_size, nr_neurons)
        'wlt': (nr_neurons, output_size), 'bl': (output_size,)
    Returns:
      (out (n_samples, output_size), coordinates == x)
    """
    n, in_f = x.shape
    w0t, b0 = params["w0t"], params["b0"]
    wht, bh = params["wht"], params["bh"]
    wlt, bl = params["wlt"], params["bl"]

    n_hidden = int(wht.shape[0])
    H = int(w0t.shape[1])
    out_f = int(wlt.shape[1])

    compute_dtype = jnp.bfloat16 if use_bf16_weights else jnp.float32

    # Lane-dense padding of the hidden / padded-final-matmul widths. Zero
    # padding keeps the math exact (tanh(0)=0 columns meet zero weight rows).
    H_pad = _round_up(H, _LANE)
    out_pad = _round_up(out_f, _LANE)

    w0t_p = _pad_axis(w0t, 1, H_pad).astype(compute_dtype)
    b0_p = _pad_axis(b0.reshape(1, H), 1, H_pad).astype(jnp.float32)

    if n_hidden == 0:
        # Tiny never-read dummies (avoid DMA'ing a full H_pad x H_pad zero block).
        wht_p = jnp.zeros((1, 16, _LANE), compute_dtype)
        bh_p = jnp.zeros((1, 1, _LANE), jnp.float32)
    else:
        wht_p = _pad_axis(_pad_axis(wht, 1, H_pad), 2, H_pad).astype(compute_dtype)
        bh_p = _pad_axis(bh.reshape(n_hidden, 1, H), 2, H_pad).astype(jnp.float32)

    wlt_p = _pad_axis(_pad_axis(wlt, 0, H_pad), 1, out_pad).astype(compute_dtype)
    bl_p = _pad_axis(bl.reshape(1, out_f), 1, out_pad).astype(jnp.float32)

    # --- VMEM budgeting (physical, buffer-count aware, generation aware) ----
    weight_arrays = (w0t_p, b0_p, wht_p, bh_p, wlt_p, bl_p)
    weight_bytes = sum(_phys_vmem_bytes(a.shape, a.dtype) for a in weight_arrays)

    try:
        vmem_cap = int(pltpu.get_tpu_info().vmem_capacity_bytes)
    except Exception:  # conservative fallback: v7x-sized VMEM
        vmem_cap = 64 << 20
    budget = int(0.7 * vmem_cap)

    def tile_bytes(tm):
        b = 2 * _phys_vmem_bytes((tm, in_f), x.dtype)        # input tile, 2 bufs
        b += 2 * _phys_vmem_bytes((tm, out_f), jnp.float32)  # output tile, 2 bufs
        b += 2 * _phys_vmem_bytes((tm, H_pad), jnp.float32)  # h (f32) + bf16 copy
        b += _phys_vmem_bytes((tm, out_pad), jnp.float32)    # padded final tile
        return b

    # Row tile: big enough to amortize per-step overhead, small enough to keep
    # >= 8 grid steps when n allows (>= 4-deep pipeline per v7x TensorCore).
    if n >= 8 * _SUBLANE:
        grid_cap = max(_SUBLANE, (n // 8) // _SUBLANE * _SUBLANE)
    else:
        grid_cap = _round_up(max(n, 1), _SUBLANE)
    tm = max(_SUBLANE, min(_round_up(row_tile, _SUBLANE), grid_cap))
    while tm > _SUBLANE and weight_bytes + tile_bytes(tm) > budget:
        tm = max(_SUBLANE, (tm // 2) // _SUBLANE * _SUBLANE)

    n_pad = _round_up(n, tm)
    grid = (n_pad // tm,)

    vmem_needed = weight_bytes + tile_bytes(tm)
    vmem_limit = int(min(int(0.9 * vmem_cap),
                         max(vmem_needed + (8 << 20), 32 << 20)))

    x_p = _pad_axis(x.astype(jnp.float32), 0, n_pad)

    buf1 = pl.Buffered(1)   # weights/biases: constant index_map -> single buffer
    in_specs = [
        pl.BlockSpec((tm, in_f), lambda i: (i, 0)),                         # x rows
        pl.BlockSpec(w0t_p.shape, lambda i: (0, 0), pipeline_mode=buf1),    # resident
        pl.BlockSpec(b0_p.shape, lambda i: (0, 0), pipeline_mode=buf1),     # resident
        pl.BlockSpec(wht_p.shape, lambda i: (0, 0, 0), pipeline_mode=buf1),  # resident
        pl.BlockSpec(bh_p.shape, lambda i: (0, 0, 0), pipeline_mode=buf1),   # resident
        pl.BlockSpec(wlt_p.shape, lambda i: (0, 0), pipeline_mode=buf1),    # resident
        pl.BlockSpec(bl_p.shape, lambda i: (0, 0), pipeline_mode=buf1),     # resident
    ]

    out_padded = pl.pallas_call(
        functools.partial(_ffn_kernel, n_hidden=n_hidden),
        out_shape=jax.ShapeDtypeStruct((n_pad, out_f), jnp.float32),
        grid=grid,
        in_specs=in_specs,
        # (tm, out_f) is legal: out_f equals the full last dim of the output.
        out_specs=pl.BlockSpec((tm, out_f), lambda i: (i, 0)),
        compiler_params=pltpu.CompilerParams(
            dimension_semantics=("parallel",),
            vmem_limit_bytes=vmem_limit),
    )(x_p, w0t_p, b0_p, wht_p, bh_p, wlt_p, bl_p)

    out = out_padded[:n, :]
    # TODO(synk): PyTorch's clone().detach().requires_grad_(True) is autograd
    # bookkeeping; in JAX gradients w.r.t. coordinates come from jax.grad, so
    # the input is returned unchanged as the coordinates.
    return out, x


def feedforward_reference(x, params, *, weights_bf16=True):
    """Pure-JAX reference. `weights_bf16=True` mirrors the kernel's dtype plan
    (bf16 matmuls, f32 accumulation / bias / tanh)."""
    def mm(a, wt):
        if weights_bf16:
            return jnp.dot(a.astype(jnp.bfloat16), wt.astype(jnp.bfloat16),
                           preferred_element_type=jnp.float32)
        return jnp.dot(a, wt, preferred_element_type=jnp.float32)

    h = jnp.tanh(mm(x, params["w0t"]) + params["b0"])
    for l in range(params["wht"].shape[0]):
        h = jnp.tanh(mm(h, params["wht"][l]) + params["bh"][l])
    return mm(h, params["wlt"]) + params["bl"], x


def init_feedforward_params(key, input_size, hidden_size, nr_neurons,
                            output_size):
    """Xavier-uniform weights (matches FeedForward.init_weights), default
    nn.Linear bias init. Weights stored pre-transposed as (fan_in, fan_out)."""
    def linear(k, fan_in, fan_out):
        kw, kb = jax.random.split(k)
        bound_w = math.sqrt(6.0 / (fan_in + fan_out))      # xavier_uniform_
        wt = jax.random.uniform(kw, (fan_in, fan_out), jnp.float32,
                                minval=-bound_w, maxval=bound_w)
        bound_b = 1.0 / math.sqrt(fan_in)                  # nn.Linear default
        b = jax.random.uniform(kb, (fan_out,), jnp.float32,
                               minval=-bound_b, maxval=bound_b)
        return wt, b

    keys = jax.random.split(key, hidden_size + 2)
    w0t, b0 = linear(keys[0], input_size, nr_neurons)
    wht_list, bh_list = [], []
    for l in range(hidden_size):
        wt, b = linear(keys[1 + l], nr_neurons, nr_neurons)
        wht_list.append(wt)
        bh_list.append(b)
    wlt, bl = linear(keys[-1], nr_neurons, output_size)

    if hidden_size > 0:
        wht = jnp.stack(wht_list)
        bh = jnp.stack(bh_list)
    else:
        wht = jnp.zeros((0, nr_neurons, nr_neurons), jnp.float32)
        bh = jnp.zeros((0, nr_neurons), jnp.float32)

    return {"w0t": w0t, "b0": b0, "wht": wht, "bh": bh, "wlt": wlt, "bl": bl}


if __name__ == "__main__":
    key = jax.random.PRNGKey(0)

    configs = [
        # (n_samples, input_size, hidden_size, nr_neurons, output_size)
        (512, 2, 2, 32, 1),    # DeepMoD-style (t, x) -> u; static-unroll path
        (300, 3, 6, 64, 2),    # fori_loop path, row padding, multi-col output
        (40, 2, 0, 32, 1),     # no hidden layers (dummy weight path)
    ]

    for cfg_i, (n, in_f, hid, neur, out_f) in enumerate(configs):
        k_x, k_p, key = jax.random.split(key, 3)
        x = jax.random.uniform(k_x, (n, in_f), jnp.float32,
                               minval=-1.0, maxval=1.0)
        params = init_feedforward_params(k_p, in_f, hid, neur, out_f)

        out, coords = feedforward_forward(x, params)
        out = jax.block_until_ready(out)

        ref_bf16, _ = feedforward_reference(x, params, weights_bf16=True)
        ref_f32, _ = feedforward_reference(x, params, weights_bf16=False)

        assert out.shape == (n, out_f), f"cfg {cfg_i}: bad output shape"
        assert coords.shape == x.shape and bool(jnp.all(coords == x)), (
            f"cfg {cfg_i}: coordinates not passed through")
        assert jnp.allclose(out, ref_bf16, atol=1e-4, rtol=1e-4), (
            f"cfg {cfg_i}: mismatch vs bf16-matched reference")
        assert jnp.allclose(out, ref_f32, atol=5e-2, rtol=5e-2), (
            f"cfg {cfg_i}: excessive drift vs full-f32 reference")

    print("KERNEL_OK")
</pallas_src>

<mosaic_0001>
module attributes {stable_mosaic.version = 11 : i64} {
  func.func @_ffn_kernel(%arg0: i32, %arg1: memref<64x2xf32, #tpu.memory_space<vmem>>, %arg2: memref<2x128xbf16, #tpu.memory_space<vmem>>, %arg3: memref<1x128xf32, #tpu.memory_space<vmem>>, %arg4: memref<2x128x128xbf16, #tpu.memory_space<vmem>>, %arg5: memref<2x1x128xf32, #tpu.memory_space<vmem>>, %arg6: memref<128x128xbf16, #tpu.memory_space<vmem>>, %arg7: memref<1x128xf32, #tpu.memory_space<vmem>>, %arg8: memref<64x1xf32, #tpu.memory_space<vmem>>) attributes {dimension_semantics = [#tpu.dimension_semantics<parallel>], iteration_bounds = array<i64: 8>, scalar_prefetch = 0 : i64, scratch_operands = 0 : i64, tpu.core_type = #tpu.core_type<tc>, window_params = [{transform_indices = @transform_0, window_bounds = array<i64: 64, 2>}, {pipeline_mode = #tpu.pipeline_mode<synchronous>, transform_indices = @transform_1, window_bounds = array<i64: 2, 128>}, {pipeline_mode = #tpu.pipeline_mode<synchronous>, transform_indices = @transform_2, window_bounds = array<i64: 1, 128>}, {pipeline_mode = #tpu.pipeline_mode<synchronous>, transform_indices = @transform_3, window_bounds = array<i64: 2, 128, 128>}, {pipeline_mode = #tpu.pipeline_mode<synchronous>, transform_indices = @transform_4, window_bounds = array<i64: 2, 1, 128>}, {pipeline_mode = #tpu.pipeline_mode<synchronous>, transform_indices = @transform_5, window_bounds = array<i64: 128, 128>}, {pipeline_mode = #tpu.pipeline_mode<synchronous>, transform_indices = @transform_6, window_bounds = array<i64: 1, 128>}, {transform_indices = @transform_7, window_bounds = array<i64: 64, 1>}]} {
    %c0 = arith.constant 0 : index
    %c0_0 = arith.constant 0 : index
    %0 = vector.load %arg1[%c0, %c0_0] : memref<64x2xf32, #tpu.memory_space<vmem>>, vector<64x2xf32>
    %1 = arith.truncf %0 : vector<64x2xf32> to vector<64x2xbf16>
    %c0_1 = arith.constant 0 : index
    %c0_2 = arith.constant 0 : index
    %2 = vector.load %arg2[%c0_1, %c0_2] : memref<2x128xbf16, #tpu.memory_space<vmem>>, vector<2x128xbf16>
    %cst = arith.constant dense<0.000000e+00> : vector<64x128xf32>
    %3 = tpu.matmul %1, %2, %cst {dimension_numbers = #tpu.dot_dimension_numbers<[1], [0], [0], [1], [0, 0, 1, 1], [], []>} : vector<64x2xbf16>, vector<2x128xbf16>, vector<64x128xf32> -> vector<64x128xf32>
    %c0_3 = arith.constant 0 : index
    %c0_4 = arith.constant 0 : index
    %4 = vector.load %arg3[%c0_3, %c0_4] : memref<1x128xf32, #tpu.memory_space<vmem>>, vector<1x128xf32>
    %5 = vector.broadcast %4 : vector<1x128xf32> to vector<64x128xf32>
    %6 = arith.addf %3, %5 : vector<64x128xf32>
    %7 = math.tanh %6 : vector<64x128xf32>
    %8 = arith.truncf %7 : vector<64x128xf32> to vector<64x128xbf16>
    %c0_5 = arith.constant 0 : index
    %c0_6 = arith.constant 0 : index
    %c0_7 = arith.constant 0 : index
    %9 = vector.load %arg4[%c0_5, %c0_6, %c0_7] : memref<2x128x128xbf16, #tpu.memory_space<vmem>>, vector<1x128x128xbf16>
    %10 = vector.shape_cast %9 : vector<1x128x128xbf16> to vector<128x128xbf16>
    %cst_8 = arith.constant dense<0.000000e+00> : vector<64x128xf32>
    %11 = tpu.matmul %8, %10, %cst_8 {dimension_numbers = #tpu.dot_dimension_numbers<[1], [0], [0], [1], [0, 0, 1, 1], [], []>} : vector<64x128xbf16>, vector<128x128xbf16>, vector<64x128xf32> -> vector<64x128xf32>
    %c0_9 = arith.constant 0 : index
    %c0_10 = arith.constant 0 : index
    %c0_11 = arith.constant 0 : index
    %12 = vector.load %arg5[%c0_9, %c0_10, %c0_11] : memref<2x1x128xf32, #tpu.memory_space<vmem>>, vector<1x1x128xf32>
    %13 = vector.shape_cast %12 : vector<1x1x128xf32> to vector<1x128xf32>
    %14 = vector.broadcast %13 : vector<1x128xf32> to vector<64x128xf32>
    %15 = arith.addf %11, %14 : vector<64x128xf32>
    %16 = math.tanh %15 : vector<64x128xf32>
    %17 = arith.truncf %16 : vector<64x128xf32> to vector<64x128xbf16>
    %c1 = arith.constant 1 : index
    %c0_12 = arith.constant 0 : index
    %c0_13 = arith.constant 0 : index
    %18 = vector.load %arg4[%c1, %c0_12, %c0_13] : memref<2x128x128xbf16, #tpu.memory_space<vmem>>, vector<1x128x128xbf16>
    %19 = vector.shape_cast %18 : vector<1x128x128xbf16> to vector<128x128xbf16>
    %cst_14 = arith.constant dense<0.000000e+00> : vector<64x128xf32>
    %20 = tpu.matmul %17, %19, %cst_14 {dimension_numbers = #tpu.dot_dimension_numbers<[1], [0], [0], [1], [0, 0, 1, 1], [], []>} : vector<64x128xbf16>, vector<128x128xbf16>, vector<64x128xf32> -> vector<64x128xf32>
    %c1_15 = arith.constant 1 : index
    %c0_16 = arith.constant 0 : index
    %c0_17 = arith.constant 0 : index
    %21 = vector.load %arg5[%c1_15, %c0_16, %c0_17] : memref<2x1x128xf32, #tpu.memory_space<vmem>>, vector<1x1x128xf32>
    %22 = vector.shape_cast %21 : vector<1x1x128xf32> to vector<1x128xf32>
    %23 = vector.broadcast %22 : vector<1x128xf32> to vector<64x128xf32>
    %24 = arith.addf %20, %23 : vector<64x128xf32>
    %25 = math.tanh %24 : vector<64x128xf32>
    %26 = arith.truncf %25 : vector<64x128xf32> to vector<64x128xbf16>
    %c0_18 = arith.constant 0 : index
    %c0_19 = arith.constant 0 : index
    %27 = vector.load %arg6[%c0_18, %c0_19] : memref<128x128xbf16, #tpu.memory_space<vmem>>, vector<128x128xbf16>
    %cst_20 = arith.constant dense<0.000000e+00> : vector<64x128xf32>
    %28 = tpu.matmul %26, %27, %cst_20 {dimension_numbers = #tpu.dot_dimension_numbers<[1], [0], [0], [1], [0, 0, 1, 1], [], []>} : vector<64x128xbf16>, vector<128x128xbf16>, vector<64x128xf32> -> vector<64x128xf32>
    %c0_21 = arith.constant 0 : index
    %c0_22 = arith.constant 0 : index
    %29 = vector.load %arg7[%c0_21, %c0_22] : memref<1x128xf32, #tpu.memory_space<vmem>>, vector<1x128xf32>
    %30 = vector.broadcast %29 : vector<1x128xf32> to vector<64x128xf32>
    %31 = arith.addf %28, %30 : vector<64x128xf32>
    %32 = vector.extract_strided_slice %31 {offsets = [0, 0], sizes = [64, 1], strides = [1, 1]} : vector<64x128xf32> to vector<64x1xf32>
    %c0_23 = arith.constant 0 : index
    %c0_24 = arith.constant 0 : index
    %33 = vector.load %arg8[%c0_23, %c0_24] : memref<64x1xf32, #tpu.memory_space<vmem>>, vector<64x1xf32>
    tpu.vector_store %arg8[%c0_23, %c0_24], %32 {strides = array<i32>} : memref<64x1xf32, #tpu.memory_space<vmem>>, vector<64x1xf32>,
    return
  }
  func.func @transform_0(%arg0: i32) -> (i32, i32) {
    %c0_i32 = arith.constant 0 : i32
    %c0_i32_0 = arith.constant 0 : i32
    return %arg0, %c0_i32 : i32, i32
  }
  func.func @transform_1(%arg0: i32) -> (i32, i32) {
    %c0_i32 = arith.constant 0 : i32
    %c0_i32_0 = arith.constant 0 : i32
    %c0_i32_1 = arith.constant 0 : i32
    return %c0_i32, %c0_i32_0 : i32, i32
  }
  func.func @transform_2(%arg0: i32) -> (i32, i32) {
    %c0_i32 = arith.constant 0 : i32
    %c0_i32_0 = arith.constant 0 : i32
    %c0_i32_1 = arith.constant 0 : i32
    return %c0_i32, %c0_i32_0 : i32, i32
  }
  func.func @transform_3(%arg0: i32) -> (i32, i32, i32) {
    %c0_i32 = arith.constant 0 : i32
    %c0_i32_0 = arith.constant 0 : i32
    %c0_i32_1 = arith.constant 0 : i32
    %c0_i32_2 = arith.constant 0 : i32
    return %c0_i32, %c0_i32_0, %c0_i32_1 : i32, i32, i32
  }
  func.func @transform_4(%arg0: i32) -> (i32, i32, i32) {
    %c0_i32 = arith.constant 0 : i32
    %c0_i32_0 = arith.constant 0 : i32
    %c0_i32_1 = arith.constant 0 : i32
    %c0_i32_2 = arith.constant 0 : i32
    return %c0_i32, %c0_i32_0, %c0_i32_1 : i32, i32, i32
  }
  func.func @transform_5(%arg0: i32) -> (i32, i32) {
    %c0_i32 = arith.constant 0 : i32
    %c0_i32_0 = arith.constant 0 : i32
    %c0_i32_1 = arith.constant 0 : i32
    return %c0_i32, %c0_i32_0 : i32, i32
  }
  func.func @transform_6(%arg0: i32) -> (i32, i32) {
    %c0_i32 = arith.constant 0 : i32
    %c0_i32_0 = arith.constant 0 : i32
    %c0_i32_1 = arith.constant 0 : i32
    return %c0_i32, %c0_i32_0 : i32, i32
  }
  func.func @transform_7(%arg0: i32) -> (i32, i32) {
    %c0_i32 = arith.constant 0 : i32
    %c0_i32_0 = arith.constant 0 : i32
    return %arg0, %c0_i32 : i32, i32
  }
}

</mosaic_0001>

<bundles_post_ra>
// kernel: tpu_custom_call.1
= control target key start
LH: loop header
LB: loop body
LE: loop exit
PB: predicated region body
PF: predicated region fallthrough
CT: control target
= control target key end

     0   :  { %s1224_s24 = smov 0   ;;  %s1343_s0 = inlined_call_operand.vmem [shape: f32[512,2], index: 0, kind: input, shape index: {}]   ;;  %s1344_s1 = inlined_call_operand.vmem [shape: bf16[2,128], index: 1, kind: input, shape index: {}]   ;;  %s1345_s2 = inlined_call_operand.vmem [shape: f32[1,128], index: 2, kind: input, shape index: {}]   ;;  %s1346_s3 = inlined_call_operand.vmem [shape: bf16[2,128,128], index: 3, kind: input, shape index: {}]   ;;  %s1347_s4 = inlined_call_operand.vmem [shape: f32[2,1,128], index: 4, kind: input, shape index: {}]   ;;  %s1348_s5 = inlined_call_operand.vmem [shape: bf16[128,128], index: 5, kind: input, shape index: {}]   ;;  %s1349_s6 = inlined_call_operand.vmem [shape: f32[1,128], index: 6, kind: input, shape index: {}]   ;;  %s1350_s7 = inlined_call_operand.vmem [shape: f32[512,1], index: 7, kind: output, shape index: {}]  }
   0x1 LB: > { %s896_s25 = sadd.s32 4294967295, %s1182_s24   ;;  %p900_p0 = scmp.ge.s32.totalorder %s1182_s24, 1  ;;  %s1182_s24 = sphi %s1224_s24, %s17_s24  }
   0x2   : > { %p238_p1 = scmp.lt.s32.totalorder %s1182_s24, 9 }
   0x4   : > { %p239_p2 = pnand %p900_p0, %p238_p1 }
   0x5   : > { %s901_s28 = sshll.u32 (!%p239_p2), %s896_s25, 3 }
   0x6   : > { %242 = sbr.rel (%p239_p2) target bundleno = 882 (0x372), region = 48  ;;  %p271_p3 = scmp.lt.s32.totalorder (!%p239_p2), %s901_s28, 63 }
   0xb   : > { %v295_v0 = vld [vmem:[%s1344_s1] sm:$0x1]  ;;  %vm316_vm0 = vcmask 1040384   ;;  %v1104_v1 = vld [vmem:[%s1346_s3 + $0x38] sm:$0xff]   ;;  %v1105_v3 = vld [vmem:[%s1346_s3 + $0x30] sm:$0xff]   ;;  %s1352_s28 = smov (!%p271_p3, %s901_s28), 63 }
   0xc   : > { %1095 = vmatprep.subr.msk.bf16.mxu0 %vm316_vm0, %v295_v0  ;;  %v318_v2 = vsel %vm316_vm0, %v295_v0, 0  ;;  %1007 = vmatprep.subr.bf16.mxu1 %v1104_v1  ;;  %s902_s10 = sshll.u32 %s1352_s28, 3  ;;  %vm303_vm1 = vcmask 15360   ;;  %v1106_v16 = vld [vmem:[%s1346_s3 + $0x28] sm:$0xff]   ;;  %v1107_v17 = vld [vmem:[%s1346_s3 + $0x20] sm:$0xff]   ;;  %v1108_v18 = vld [vmem:[%s1346_s3 + $0x18] sm:$0xff]  }
   0xd   : > { %998 = vmatpush3.bf16.msra.mxu0 %v318_v2  ;;  %1008 = vmatpush3.bf16.msra.mxu1 %v1104_v1  ;;  %s274_s13 = scalar_lea.vmem %s1343_s0, %s902_s10  ;;  %v1109_v19 = vld [vmem:[%s1346_s3 + $0x10] sm:$0xff]   ;;  %v1110_v20 = vld [vmem:[%s1346_s3 + $0x8] sm:$0xff]   ;;  %v1111_v21 = vld [vmem:[%s1346_s3] sm:$0xff]   ;;  %s280_s30 = scalar_lea.vmem %s1350_s7, %s902_s10  ;;  %vm831_vm2 = vcmask 7168  }
   0xe   : > { %1009 = vmatprep.subr.bf16.mxu1 %v1105_v3  ;;  %v283_v4 = vld [vmem:[%s274_s13] sm:$0xff]  ;;  %v284_v5 = vld [vmem:[%s274_s13 + $0x8] sm:$0xff]  ;;  %v285_v6 = vld [vmem:[%s274_s13 + $0x10] sm:$0xff] }
   0xf   : > { %v291_v7 = vpack.c.bf16 %v284_v5, %v283_v4  ;;  %v286_v8 = vld [vmem:[%s274_s13 + $0x18] sm:$0xff]  ;;  %v287_v9 = vld [vmem:[%s274_s13 + $0x20] sm:$0xff]  ;;  %v288_v10 = vld [vmem:[%s274_s13 + $0x28] sm:$0xff] }
  0x10   : > { %v292_v11 = vpack.c.bf16 %v286_v8, %v285_v6  ;;  %v293_v12 = vpack.c.bf16 %v288_v10, %v287_v9  ;;  %v289_v13 = vld [vmem:[%s274_s13 + $0x30] sm:$0xff]  ;;  %v290_v14 = vld [vmem:[%s274_s13 + $0x38] sm:$0xff]  ;;  %v905_v25 = vld [vmem:[%s1345_s2] ss:$0 sm:$0xff] }
  0x11   : > { %1010 = vmatpush3.bf16.msra.mxu1 %v1105_v3  ;;  %999 = vmatprep.mubr.msk.bf16.mxu0 %vm303_vm1, %v291_v7  ;;  %v294_v15 = vpack.c.bf16 %v290_v14, %v289_v13  ;;  %v1112_v22 = vld [vmem:[%s1346_s3 + $0x78] sm:$0xff]   ;;  %v1113_v23 = vld [vmem:[%s1346_s3 + $0x70] sm:$0xff]   ;;  %v1114_v53 = vld [vmem:[%s1346_s3 + $0x68] sm:$0xff]  }
  0x12   : > { %1000 = vmatmul.mubr.msk.bf16.vlgmr.msra.gmra.mxu0 %vm303_vm1, %v292_v11  ;;  %1011 = vmatprep.subr.bf16.mxu1 %v1106_v16  ;;  %v1115_v54 = vld [vmem:[%s1346_s3 + $0x60] sm:$0xff]   ;;  %v1116_v55 = vld [vmem:[%s1346_s3 + $0x58] sm:$0xff]   ;;  %v1117_v56 = vld [vmem:[%s1346_s3 + $0x50] sm:$0xff]  }
  0x13   : > { %1003 = vmatprep.mubr.msk.bf16.mxu0 %vm303_vm1, %v293_v12  ;;  %1031 = vmatprep.subr.bf16.mxu0 %v1112_v22  ;;  %v1118_v57 = vld [vmem:[%s1346_s3 + $0x48] sm:$0xff]   ;;  %v1119_v58 = vld [vmem:[%s1346_s3 + $0x40] sm:$0xff]   ;;  %v1120_v59 = vld [vmem:[%s1348_s5 + $0x38] sm:$0xff]  }
  0x14   : > { %1032 = vmatpush3.bf16.msra.mxu0 %v1112_v22  ;;  %v1121_v60 = vld [vmem:[%s1348_s5 + $0x30] sm:$0xff]   ;;  %v910_v62 = vld [vmem:[%s1347_s4] ss:$0 sm:$0xff] }
  0x15   : > { %1012 = vmatpush3.bf16.msra.mxu1 %v1106_v16  ;;  %1033 = vmatprep.subr.bf16.mxu0 %v1113_v23 }
  0x16   : > { %1013 = vmatprep.subr.bf16.mxu1 %v1107_v17 }
  0x18   : > { %1034 = vmatpush3.bf16.msra.mxu0 %v1113_v23 }
  0x19   : > { %1014 = vmatpush3.bf16.msra.mxu1 %v1107_v17  ;;  %1035 = vmatprep.subr.bf16.mxu0 %v1114_v53 }
  0x1a   : > { %1004 = vmatmul.mubr.msk.bf16.gmra.mxu0 %vm303_vm1, %v294_v15  ;;  %1015 = vmatprep.subr.bf16.mxu1 %v1108_v18 }
  0x1c   : > { %1036 = vmatpush3.bf16.msra.mxu0 %v1114_v53 }
  0x1d   : > { %1016 = vmatpush3.bf16.msra.mxu1 %v1108_v18  ;;  %1037 = vmatprep.subr.bf16.mxu0 %v1115_v54 }
  0x1e   : > { %1017 = vmatprep.subr.bf16.mxu1 %v1109_v19 }
  0x20   : > { %1038 = vmatpush3.bf16.msra.mxu0 %v1115_v54 }
  0x21   : > { %1018 = vmatpush3.bf16.msra.mxu1 %v1109_v19  ;;  %1039 = vmatprep.subr.bf16.mxu0 %v1116_v55 }
  0x22   : > { %1019 = vmatprep.subr.bf16.mxu1 %v1110_v20 }
  0x24   : > { %1040 = vmatpush3.bf16.msra.mxu0 %v1116_v55 }
  0x25   : > { %1020 = vmatpush3.bf16.msra.mxu1 %v1110_v20  ;;  %1041 = vmatprep.subr.bf16.mxu0 %v1117_v56 }
  0x26   : > { %1021 = vmatprep.subr.bf16.mxu1 %v1111_v21 }
  0x28   : > { %1042 = vmatpush3.bf16.msra.mxu0 %v1117_v56 }
  0x29   : > { %1022 = vmatpush3.bf16.msra.mxu1 %v1111_v21  ;;  %1043 = vmatprep.subr.bf16.mxu0 %v1118_v57 }
  0x2a   : > { %1079 = vmatprep.subr.bf16.mxu1 %v1120_v59 }
  0x2c   : > { %1044 = vmatpush3.bf16.msra.mxu0 %v1118_v57 }
  0x2d   : > { %1045 = vmatprep.subr.bf16.mxu0 %v1119_v58 }
  0x30   : > { %1046 = vmatpush3.bf16.msra.mxu0 %v1119_v58 }
  0x31   : > { %1055 = vmatprep.subr.bf16.mxu0 %v1120_v59 }
  0xd2   : > { %v1001_v24 = vpop.f32.mrf.mxu0 }
  0xd3   : > { %v363_v30 = vadd.f32 %v1001_v24, %v905_v25 }
  0xd4   : > { %v354_v26 = vpop.f32.mrf.mxu0 }
  0xd5   : > { %v355_v27 = vadd.f32 %v905_v25, %v354_v26  ;;  %v1122_v26 = vld [vmem:[%s1348_s5 + $0x28] sm:$0xff]  }
  0xd6   : > { %v1002_v28 = vpop.f32.mrf.mxu0 }
  0xd7   : > { %v366_v29 = vadd.f32 %v1002_v28, %v905_v25  ;;  %1128 = vtanh.f32 %v355_v27  ;;  %v1123_v27 = vld [vmem:[%s1348_s5 + $0x20] sm:$0xff]   ;;  %v1124_v28 = vld [vmem:[%s1348_s5 + $0x18] sm:$0xff]  }
  0xd8   : > { %v357_v31 = vpop.f32.mrf.mxu0 }
  0xd9   : > { %v358_v32 = vadd.f32 %v905_v25, %v357_v31  ;;  %1130 = vtanh.f32 %v366_v29  ;;  %v1125_v29 = vld [vmem:[%s1348_s5 + $0x10] sm:$0xff]   ;;  %v1127_v31 = vld [vmem:[%s1348_s5] sm:$0xff]  }
  0xda   : > { %v1005_v33 = vpop.f32.mrf.mxu0 }
  0xdb   : > { %1132 = vtanh.f32 %v358_v32  ;;  %v379_v38 = vadd.f32 %v1005_v33, %v905_v25  ;;  %v936_v33 = vld [vmem:[%s1347_s4 + $0x1] ss:$0 sm:$0xff] }
  0xdc   : > { %1134 = vtanh.f32 %v363_v30  ;;  %v370_v34 = vpop.f32.mrf.mxu0  ;;  %v1126_v30 = vld [vmem:[%s1348_s5 + $0x8] sm:$0xff]  }
  0xdd   : > { %v371_v35 = vadd.f32 %v905_v25, %v370_v34 }
  0xde   : > { %v1006_v36 = vpop.f32.mrf.mxu0 }
  0xdf   : > { %v382_v37 = vadd.f32 %v1006_v36, %v905_v25  ;;  %1136 = vtanh.f32 %v371_v35 }
  0xe0   : > { %v373_v39 = vpop.f32.mrf.mxu0 }
  0xe1   : > { %v374_v40 = vadd.f32 %v905_v25, %v373_v39  ;;  %1138 = vtanh.f32 %v382_v37 }
  0xe3   : > { %1140 = vtanh.f32 %v374_v40 }
  0xe4   : > { %1142 = vtanh.f32 %v379_v38  ;;  %v1129_v41 = vpop.eup %1128 }
  0xe6   : > { %v1131_v42 = vpop.eup %1130 }
  0xe8   : > { %v1133_v43 = vpop.eup %1132 }
  0xe9   : > { %v1135_v44 = vpop.eup %1134  ;;  %v393_v45 = vpack.c.bf16 %v1133_v43, %v1129_v41 }
  0xea   : > { %v394_v46 = vpack.c.bf16 %v1131_v42, %v1135_v44 }
  0xeb   : > { %1023 = vmatprep.mubr.bf16.mxu1 %v393_v45 }
  0xec   : > { %1024 = vmatmul.mubr.bf16.vlgmr.msra.gmra.mxu1 %v394_v46  ;;  %v1137_v47 = vpop.eup %1136 }
  0xed   : > { %1087 = vmatpush3.bf16.msra.mxu1 %v1120_v59 }
  0xee   : > { %v1139_v48 = vpop.eup %1138  ;;  %1080 = vmatprep.subr.bf16.mxu1 %v1121_v60 }
  0xf0   : > { %v1141_v49 = vpop.eup %1140 }
  0xf1   : > { %v1143_v50 = vpop.eup %1142  ;;  %v395_v51 = vpack.c.bf16 %v1141_v49, %v1137_v47  ;;  %1088 = vmatpush3.bf16.msra.mxu1 %v1121_v60 }
  0xf2   : > { %v396_v52 = vpack.c.bf16 %v1139_v48, %v1143_v50  ;;  %1081 = vmatprep.subr.bf16.mxu1 %v1122_v26 }
  0xf3   : > { %1027 = vmatprep.mubr.bf16.mxu1 %v395_v51 }
  0xf4   : > { %1028 = vmatmul.mubr.bf16.gmra.mxu1 %v396_v52 }
  0xf5   : > { %1089 = vmatpush3.bf16.msra.mxu1 %v1122_v26 }
  0xf6   : > { %1082 = vmatprep.subr.bf16.mxu1 %v1123_v27 }
  0xf9   : > { %1090 = vmatpush3.bf16.msra.mxu1 %v1123_v27 }
  0xfa   : > { %1083 = vmatprep.subr.bf16.mxu1 %v1124_v28 }
  0xfd   : > { %1091 = vmatpush3.bf16.msra.mxu1 %v1124_v28 }
  0xfe   : > { %1084 = vmatprep.subr.bf16.mxu1 %v1125_v29 }
 0x101   : > { %1092 = vmatpush3.bf16.msra.mxu1 %v1125_v29 }
 0x102   : > { %1085 = vmatprep.subr.bf16.mxu1 %v1126_v30 }
 0x105   : > { %1093 = vmatpush3.bf16.msra.mxu1 %v1126_v30 }
 0x106   : > { %1086 = vmatprep.subr.bf16.mxu1 %v1127_v31 }
 0x109   : > { %1094 = vmatpush3.bf16.msra.mxu1 %v1127_v31 }
 0x1ac   : > { %v1025_v61 = vpop.f32.mrf.mxu1 }
 0x1ad   : > { %v511_v3 = vadd.f32 %v1025_v61, %v910_v62  ;;  %v945_v61 = vld [vmem:[%s1349_s6] ss:$0 sm:$0xff] }
 0x1ae   : > { %v502_v63 = vpop.f32.mrf.mxu1 }
 0x1af   : > { %v503_v0 = vadd.f32 %v910_v62, %v502_v63 }
 0x1b0   : > { %v1026_v1 = vpop.f32.mrf.mxu1 }
 0x1b1   : > { %v514_v2 = vadd.f32 %v1026_v1, %v910_v62  ;;  %1144 = vtanh.f32 %v503_v0 }
 0x1b2   : > { %v505_v4 = vpop.f32.mrf.mxu1 }
 0x1b3   : > { %v506_v5 = vadd.f32 %v910_v62, %v505_v4  ;;  %1146 = vtanh.f32 %v514_v2 }
 0x1b4   : > { %v1029_v6 = vpop.f32.mrf.mxu1 }
 0x1b5   : > { %1148 = vtanh.f32 %v506_v5  ;;  %v527_v11 = vadd.f32 %v1029_v6, %v910_v62 }
 0x1b6   : > { %1150 = vtanh.f32 %v511_v3  ;;  %v518_v7 = vpop.f32.mrf.mxu1 }
 0x1b7   : > { %v519_v8 = vadd.f32 %v910_v62, %v518_v7 }
 0x1b8   : > { %v1030_v9 = vpop.f32.mrf.mxu1 }
 0x1b9   : > { %v530_v10 = vadd.f32 %v1030_v9, %v910_v62  ;;  %1152 = vtanh.f32 %v519_v8 }
 0x1ba   : > { %v521_v12 = vpop.f32.mrf.mxu1 }
 0x1bb   : > { %v522_v13 = vadd.f32 %v910_v62, %v521_v12  ;;  %1154 = vtanh.f32 %v530_v10 }
 0x1bd   : > { %1156 = vtanh.f32 %v522_v13 }
 0x1be   : > { %1158 = vtanh.f32 %v527_v11  ;;  %v1145_v14 = vpop.eup %1144 }
 0x1c0   : > { %v1147_v15 = vpop.eup %1146 }
 0x1c2   : > { %v1149_v16 = vpop.eup %1148 }
 0x1c3   : > { %v1151_v17 = vpop.eup %1150  ;;  %v541_v18 = vpack.c.bf16 %v1149_v16, %v1145_v14 }
 0x1c4   : > { %v542_v19 = vpack.c.bf16 %v1147_v15, %v1151_v17 }
 0x1c5   : > { %1047 = vmatprep.mubr.bf16.mxu0 %v541_v18 }
 0x1c6   : > { %1048 = vmatmul.mubr.bf16.vlgmr.msra.gmra.mxu0 %v542_v19  ;;  %v1153_v20 = vpop.eup %1152 }
 0x1c7   : > { %1056 = vmatpush3.bf16.msra.mxu0 %v1120_v59 }
 0x1c8   : > { %1057 = vmatprep.subr.bf16.mxu0 %v1121_v60  ;;  %v1155_v21 = vpop.eup %1154 }
 0x1ca   : > { %v1157_v22 = vpop.eup %1156 }
 0x1cb   : > { %v1159_v23 = vpop.eup %1158  ;;  %v543_v24 = vpack.c.bf16 %v1157_v22, %v1153_v20  ;;  %1058 = vmatpush3.bf16.msra.mxu0 %v1121_v60 }
 0x1cc   : > { %v544_v25 = vpack.c.bf16 %v1155_v21, %v1159_v23  ;;  %1059 = vmatprep.subr.bf16.mxu0 %v1122_v26 }
 0x1cd   : > { %1051 = vmatprep.mubr.bf16.mxu0 %v543_v24 }
 0x1ce   : > { %1052 = vmatmul.mubr.bf16.gmra.mxu0 %v544_v25 }
 0x1cf   : > { %1060 = vmatpush3.bf16.msra.mxu0 %v1122_v26 }
 0x1d0   : > { %1061 = vmatprep.subr.bf16.mxu0 %v1123_v27 }
 0x1d3   : > { %1062 = vmatpush3.bf16.msra.mxu0 %v1123_v27 }
 0x1d4   : > { %1063 = vmatprep.subr.bf16.mxu0 %v1124_v28 }
 0x1d7   : > { %1064 = vmatpush3.bf16.msra.mxu0 %v1124_v28 }
 0x1d8   : > { %1065 = vmatprep.subr.bf16.mxu0 %v1125_v29 }
 0x1db   : > { %1066 = vmatpush3.bf16.msra.mxu0 %v1125_v29 }
 0x1dc   : > { %1067 = vmatprep.subr.bf16.mxu0 %v1126_v30 }
 0x1df   : > { %1068 = vmatpush3.bf16.msra.mxu0 %v1126_v30 }
 0x1e0   : > { %1069 = vmatprep.subr.bf16.mxu0 %v1127_v31 }
 0x1e3   : > { %1070 = vmatpush3.bf16.msra.mxu0 %v1127_v31 }
 0x286   : > { %v1049_v32 = vpop.f32.mrf.mxu0 }
 0x287   : > { %v661_v38 = vadd.f32 %v1049_v32, %v936_v33 }
 0x288   : > { %v652_v34 = vpop.f32.mrf.mxu0 }
 0x289   : > { %v653_v35 = vadd.f32 %v936_v33, %v652_v34 }
 0x28a   : > { %v1050_v36 = vpop.f32.mrf.mxu0 }
 0x28b   : > { %v664_v37 = vadd.f32 %v1050_v36, %v936_v33  ;;  %1160 = vtanh.f32 %v653_v35 }
 0x28c   : > { %v655_v39 = vpop.f32.mrf.mxu0 }
 0x28d   : > { %v656_v40 = vadd.f32 %v936_v33, %v655_v39  ;;  %1162 = vtanh.f32 %v664_v37 }
 0x28e   : > { %v1053_v41 = vpop.f32.mrf.mxu0 }
 0x28f   : > { %1164 = vtanh.f32 %v656_v40  ;;  %v677_v46 = vadd.f32 %v1053_v41, %v936_v33 }
 0x290   : > { %1166 = vtanh.f32 %v661_v38  ;;  %v668_v42 = vpop.f32.mrf.mxu0 }
 0x291   : > { %v669_v43 = vadd.f32 %v936_v33, %v668_v42 }
 0x292   : > { %v1054_v44 = vpop.f32.mrf.mxu0 }
 0x293   : > { %v680_v45 = vadd.f32 %v1054_v44, %v936_v33  ;;  %1168 = vtanh.f32 %v669_v43 }
 0x294   : > { %v671_v47 = vpop.f32.mrf.mxu0 }
 0x295   : > { %v672_v48 = vadd.f32 %v936_v33, %v671_v47  ;;  %1170 = vtanh.f32 %v680_v45 }
 0x297   : > { %1172 = vtanh.f32 %v672_v48 }
 0x298   : > { %1174 = vtanh.f32 %v677_v46  ;;  %v1161_v49 = vpop.eup %1160 }
 0x29a   : > { %v1163_v50 = vpop.eup %1162 }
 0x29c   : > { %v1165_v51 = vpop.eup %1164 }
 0x29d   : > { %v1167_v52 = vpop.eup %1166  ;;  %v691_v53 = vpack.c.bf16 %v1165_v51, %v1161_v49 }
 0x29e   : > { %v692_v54 = vpack.c.bf16 %v1163_v50, %v1167_v52 }
 0x29f   : > { %1071 = vmatprep.mubr.bf16.mxu0 %v691_v53 }
 0x2a0   : > { %1072 = vmatmul.mubr.bf16.vlgmr.msra.gmra.mxu0 %v692_v54  ;;  %v1169_v55 = vpop.eup %1168 }
 0x2a2   : > { %v1171_v56 = vpop.eup %1170 }
 0x2a4   : > { %v1173_v57 = vpop.eup %1172 }
 0x2a5   : > { %v1175_v58 = vpop.eup %1174  ;;  %v693_v59 = vpack.c.bf16 %v1173_v57, %v1169_v55 }
 0x2a6   : > { %v694_v60 = vpack.c.bf16 %v1171_v56, %v1175_v58 }
 0x2a7   : > { %1075 = vmatprep.mubr.bf16.mxu1 %v693_v59 }
 0x2a8   : > { %1076 = vmatmul.mubr.bf16.vlgmr.msra.gmra.mxu1 %v694_v60 }
 0x360   : > { %v1073_v62 = vpop.f32.mrf.mxu0 }
 0x361   : > { %v809_v63 = vadd.f32 %v1073_v62, %v945_v61 }
 0x362   : > { %v800_v0 = vpop.f32.mrf.mxu0 }
 0x363   : > { %834 = vst.msk [vmem:[%s280_s30 + $0x10] sm:$0xff] %vm831_vm2, %v809_v63  ;;  %v801_v1 = vadd.f32 %v945_v61, %v800_v0 }
 0x364   : > { %v1074_v2 = vpop.f32.mrf.mxu0 }
 0x365   : > { %832 = vst.msk [vmem:[%s280_s30] sm:$0xff] %vm831_vm2, %v801_v1  ;;  %v812_v3 = vadd.f32 %v1074_v2, %v945_v61 }
 0x366   : > { %v803_v4 = vpop.f32.mrf.mxu0 }
 0x367   : > { %835 = vst.msk [vmem:[%s280_s30 + $0x18] sm:$0xff] %vm831_vm2, %v812_v3  ;;  %v804_v5 = vadd.f32 %v945_v61, %v803_v4 }
 0x368   : > { %v1077_v6 = vpop.f32.mrf.mxu1 }
 0x369   : > { %833 = vst.msk [vmem:[%s280_s30 + $0x8] sm:$0xff] %vm831_vm2, %v804_v5  ;;  %v825_v7 = vadd.f32 %v1077_v6, %v945_v61 }
 0x36a   : > { %v816_v8 = vpop.f32.mrf.mxu1 }
 0x36b   : > { %838 = vst.msk [vmem:[%s280_s30 + $0x30] sm:$0xff] %vm831_vm2, %v825_v7  ;;  %v817_v9 = vadd.f32 %v945_v61, %v816_v8 }
 0x36c   : > { %v1078_v10 = vpop.f32.mrf.mxu1 }
 0x36d   : > { %836 = vst.msk [vmem:[%s280_s30 + $0x20] sm:$0xff] %vm831_vm2, %v817_v9  ;;  %v828_v11 = vadd.f32 %v1078_v10, %v945_v61 }
 0x36e   : > { %v819_v12 = vpop.f32.mrf.mxu1 }
 0x36f   : > { %839 = vst.msk [vmem:[%s280_s30 + $0x38] sm:$0xff] %vm831_vm2, %v828_v11  ;;  %v820_v13 = vadd.f32 %v945_v61, %v819_v12 }
 0x371   : > { %837 = vst.msk [vmem:[%s280_s30 + $0x28] sm:$0xff] %vm831_vm2, %v820_v13 }
 0x372 PF: > { %s17_s24 = sadd.s32 1, %s1182_s24  }
 0x373   : > { %p14_p4 = scmp.ge.s32.totalorder %s17_s24, 10  }
 0x375   :  { %16 = sbr.rel (!%p14_p4) target bundleno = 1 (0x1), region = 80 }

</bundles_post_ra>
